<compile_context>
chip_gen: v6e
topology: v6e:2x2x1
jax: 0.10.0
libtpu: 0.0.40
codegen_flags: <defaults>
</compile_context>

<pallas_src>
import jax
import jax.numpy as jnp
import numpy as np
from jax import lax
from jax.experimental import pallas as pl
from jax.experimental.pallas import tpu as pltpu


def _silu(v):
    return v * jax.nn.sigmoid(v)


def _round_up(n, m):
    return ((n + m - 1) // m) * m


def _resident():
    # Whole-array operand kept VMEM-resident for the entire grid (constant
    # block, so no pipelining / double-buffering is needed).
    return pl.BlockSpec(memory_space=pltpu.MemorySpace.VMEM)


def _vmem_limit_bytes():
    cap = 64 * 1024 * 1024
    try:
        cap = int(getattr(pltpu.get_tpu_info(), "vmem_capacity_bytes", cap))
    except Exception:
        pass
    return (cap * 3) // 4


# --------------------------------------------------------------------------
# Kernel 0: edge precompute  x_kj = silu(x @ W_kj + b) * (rbf @ W_rbf)
# --------------------------------------------------------------------------
def xkj_kernel(x_ref, rbf_ref, w_kj_ref, b_kj_ref, w_rbf_ref, out_ref):
    f32, bf16 = jnp.float32, jnp.bfloat16
    rbf_p = jnp.dot(rbf_ref[...].astype(bf16), w_rbf_ref[...],
                    preferred_element_type=f32)
    xk = _silu(jnp.dot(x_ref[...].astype(bf16), w_kj_ref[...],
                       preferred_element_type=f32) + b_kj_ref[...])
    out_ref[...] = (xk * rbf_p).astype(bf16)


# --------------------------------------------------------------------------
# Kernel 1: triplet phase (gather -> fused bilinear -> scatter-sum)
# --------------------------------------------------------------------------
def triplet_kernel(idx_kj_ref, idx_ji_ref, sbf_ref, xkj_ref,
                   w_sbf_ref, w_bil_ref, scat_ref):
    f32, bf16 = jnp.float32, jnp.bfloat16
    Ep, Hp = xkj_ref.shape
    Tt = sbf_ref.shape[0]
    B = w_sbf_ref.shape[1]

    @pl.when(pl.program_id(1) == 0)
    def _():
        scat_ref[...] = jnp.zeros_like(scat_ref)

    # Gather one-hot built directly in [Tt, Ep] orientation -> the gather is a
    # plain last-dim contraction on the MXU (no transposed-operand relayout).
    # Padded triplets carry idx = -1 and match nothing (all-zero rows).
    lane_e = lax.broadcasted_iota(jnp.int32, (Tt, Ep), 1)
    oh_kj = (idx_kj_ref[...] == lane_e).astype(bf16)            # [Tt, Ep]
    gathered = jnp.dot(oh_kj, xkj_ref[...],
                       preferred_element_type=f32)              # [Tt, Hp]

    sbf_p = jnp.dot(sbf_ref[...].astype(bf16), w_sbf_ref[...],
                    preferred_element_type=f32)                 # [Tt, B]

    # Fused bilinear einsum: ONE wide bf16 matmul, then a VPU weighted sum
    # over B lane-dense 128-wide chunks (replaces B tiny [T,H]@[H,H] matmuls).
    big = jnp.dot(gathered.astype(bf16), w_bil_ref[...],
                  preferred_element_type=f32)                   # [Tt, B*Hp]
    msg = sbf_p[:, 0:1] * big[:, 0:Hp]
    for b in range(1, B):
        msg = msg + sbf_p[:, b:b + 1] * big[:, b * Hp:(b + 1) * Hp]

    # Scatter-sum over idx_ji: one-hot [Ep, Tt] @ msg [Tt, Hp] (last-dim
    # contraction) accumulated into this core's resident [Ep, Hp] plane.
    sub_e = lax.broadcasted_iota(jnp.int32, (Ep, Tt), 0)
    oh_ji = (idx_ji_ref[...] == sub_e).astype(bf16)             # [Ep, Tt]
    scat_ref[...] += jnp.dot(oh_ji, msg.astype(bf16),
                             preferred_element_type=f32)


# --------------------------------------------------------------------------
# Kernel 2: edge phase (lin_ji + residual MLPs + skip), tiled over edges
# --------------------------------------------------------------------------
def edge_kernel(x_ref, scat_ref, w_ji_ref, b_ji_ref,
                w_before_ref, b_before_ref, w_lin_ref, b_lin_ref,
                w_after_ref, b_after_ref, out_ref):
    f32, bf16 = jnp.float32, jnp.bfloat16
    x = x_ref[...]                             # reused for the skip connection

    h = _silu(jnp.dot(x.astype(bf16), w_ji_ref[...],
                      preferred_element_type=f32) + b_ji_ref[...])

    scat = scat_ref[0]
    for c in range(1, scat_ref.shape[0]):      # sum the per-core scatter planes
        scat = scat + scat_ref[c]
    h = h + scat

    nb2 = w_before_ref.shape[0]
    for i in range(0, nb2, 2):
        t1 = _silu(jnp.dot(h.astype(bf16), w_before_ref[i],
                           preferred_element_type=f32) + b_before_ref[i])
        h = h + _silu(jnp.dot(t1.astype(bf16), w_before_ref[i + 1],
                              preferred_element_type=f32) + b_before_ref[i + 1])

    h = _silu(jnp.dot(h.astype(bf16), w_lin_ref[...],
                      preferred_element_type=f32) + b_lin_ref[...]) + x

    na2 = w_after_ref.shape[0]
    for i in range(0, na2, 2):
        t1 = _silu(jnp.dot(h.astype(bf16), w_after_ref[i],
                           preferred_element_type=f32) + b_after_ref[i])
        h = h + _silu(jnp.dot(t1.astype(bf16), w_after_ref[i + 1],
                              preferred_element_type=f32) + b_after_ref[i + 1])

    out_ref[...] = h


# --------------------------------------------------------------------------
# Wrapper: padding, BlockSpecs, grids
# --------------------------------------------------------------------------
def interaction_block(x, rbf, sbf, idx_kj, idx_ji, p, *,
                      t_tile=256, e_tile=128, num_cores=2):
    E, H = x.shape
    T, SR = sbf.shape
    R = rbf.shape[1]
    B = p["w_sbf"].shape[1]

    f32, bf16 = jnp.float32, jnp.bfloat16

    Hp = _round_up(H, 128)                    # lane-dense feature axis
    Ep = _round_up(E, e_tile)
    Tp = _round_up(T, num_cores * t_tile)     # even triplet split across cores

    # --- pad activations (zeros) and indices (-1 never matches an edge) -----
    xp = jnp.zeros((Ep, Hp), f32).at[:E, :H].set(x)
    rbfp = jnp.zeros((Ep, R), f32).at[:E, :].set(rbf)
    sbfp = jnp.zeros((Tp, SR), f32).at[:T, :].set(sbf)
    ikj = jnp.full((Tp, 1), -1, jnp.int32).at[:T, 0].set(idx_kj.astype(jnp.int32))
    iji = jnp.full((1, Tp), -1, jnp.int32).at[0, :T].set(idx_ji.astype(jnp.int32))

    # --- pad weights to lane-dense width and cast to bf16 (biases stay f32) -
    def pad_cols(w):                          # [a, H] -> [a, Hp] bf16
        return jnp.zeros((w.shape[0], Hp), f32).at[:, :H].set(w).astype(bf16)

    def pad_bias(b):                          # [1, H] -> [1, Hp] f32
        return jnp.zeros((1, Hp), f32).at[:, :H].set(b)

    def pad_hh(w):                            # [H, H] -> [Hp, Hp] bf16
        return jnp.zeros((Hp, Hp), f32).at[:H, :H].set(w).astype(bf16)

    def pad_shh(w):                           # [n, H, H] -> [n, Hp, Hp] bf16
        return jnp.zeros((w.shape[0], Hp, Hp), f32).at[:, :H, :H].set(w).astype(bf16)

    def pad_sbias(b):                         # [n, 1, H] -> [n, 1, Hp] f32
        return jnp.zeros((b.shape[0], 1, Hp), f32).at[:, :, :H].set(b)

    w_rbf = pad_cols(p["w_rbf"])
    w_sbf = p["w_sbf"].astype(bf16)
    w_kj, b_kj = pad_hh(p["w_kj"]), pad_bias(p["b_kj"])
    w_ji, b_ji = pad_hh(p["w_ji"]), pad_bias(p["b_ji"])
    w_lin, b_lin = pad_hh(p["w_lin"]), pad_bias(p["b_lin"])
    w_before, b_before = pad_shh(p["w_before"]), pad_sbias(p["b_before"])
    w_after, b_after = pad_shh(p["w_after"]), pad_sbias(p["b_after"])

    # Bilinear parameter W[i, b, l] -> flat [Hp, B*Hp] with
    # W_flat[l, b*Hp+i] = W[i, b, l], so (g @ W_flat)[t, b*Hp+i] = sum_l g[t,l] W[i,b,l].
    Wb = p["W_bil"]
    Wb_p = jnp.zeros((Hp, B, Hp), f32).at[:H, :, :H].set(Wb)
    w_bil_flat = jnp.transpose(Wb_p, (2, 1, 0)).reshape(Hp, B * Hp).astype(bf16)

    n_e = Ep // e_tile
    n_t_core = Tp // (num_cores * t_tile)

    vmem_limit = _vmem_limit_bytes()

    # Guard the VMEM-resident-accumulator strategy (see TODO at top of file).
    est_k1 = (Ep * Hp * 2 + Hp * B * Hp * 2            # resident xkj, w_bil
              + 2 * Ep * Hp * 4                        # scat plane (+slack)
              + 2 * t_tile * B * Hp * 4                # big/msg temporaries
              + 2 * t_tile * Ep * 2                    # one-hot temporaries
              + 2 * (t_tile * (SR + 2) * 4))           # double-buffered tiles
    assert est_k1 < vmem_limit, (
        f"triplet-kernel VMEM estimate {est_k1} exceeds limit {vmem_limit}; "
        "an E-tiled scatter path is required for this problem size")

    # ---------------- kernel 0: x_kj precompute (parallel over E tiles) -----
    xkj = pl.pallas_call(
        xkj_kernel,
        out_shape=jax.ShapeDtypeStruct((Ep, Hp), bf16),
        grid_spec=pltpu.PrefetchScalarGridSpec(
            num_scalar_prefetch=0,
            grid=(n_e,),
            in_specs=[
                pl.BlockSpec((e_tile, Hp), lambda e: (e, 0)),   # x tile
                pl.BlockSpec((e_tile, R), lambda e: (e, 0)),    # rbf tile
                _resident(),                                    # w_kj
                _resident(),                                    # b_kj
                _resident(),                                    # w_rbf
            ],
            out_specs=pl.BlockSpec((e_tile, Hp), lambda e: (e, 0)),
        ),
        compiler_params=pltpu.CompilerParams(
            dimension_semantics=("parallel",),
            vmem_limit_bytes=vmem_limit,
        ),
    )(xp, rbfp, w_kj, b_kj, w_rbf)

    # ---------------- kernel 1: triplet gather / bilinear / scatter ---------
    scat = pl.pallas_call(
        triplet_kernel,
        out_shape=jax.ShapeDtypeStruct((num_cores, Ep, Hp), f32),
        grid_spec=pltpu.PrefetchScalarGridSpec(
            num_scalar_prefetch=0,
            grid=(num_cores, n_t_core),
            in_specs=[
                pl.BlockSpec((t_tile, 1), lambda c, t: (c * n_t_core + t, 0)),  # idx_kj col
                pl.BlockSpec((1, t_tile), lambda c, t: (0, c * n_t_core + t)),  # idx_ji row
                pl.BlockSpec((t_tile, SR), lambda c, t: (c * n_t_core + t, 0)), # sbf tile
                _resident(),                                    # x_kj (bf16)
                _resident(),                                    # w_sbf
                _resident(),                                    # w_bil_flat
            ],
            out_specs=pl.BlockSpec((None, Ep, Hp), lambda c, t: (c, 0, 0)),
        ),
        compiler_params=pltpu.CompilerParams(
            dimension_semantics=("parallel", "arbitrary"),
            vmem_limit_bytes=vmem_limit,
        ),
    )(ikj, iji, sbfp, xkj, w_sbf, w_bil_flat)

    # ---------------- kernel 2: edge phase (parallel over E tiles) ----------
    out = pl.pallas_call(
        edge_kernel,
        out_shape=jax.ShapeDtypeStruct((Ep, Hp), f32),
        grid_spec=pltpu.PrefetchScalarGridSpec(
            num_scalar_prefetch=0,
            grid=(n_e,),
            in_specs=[
                pl.BlockSpec((e_tile, Hp), lambda e: (e, 0)),                 # x tile
                pl.BlockSpec((num_cores, e_tile, Hp), lambda e: (0, e, 0)),   # scat planes
                _resident(), _resident(),                                     # w_ji, b_ji
                _resident(), _resident(),                                     # before-skip
                _resident(), _resident(),                                     # w_lin, b_lin
                _resident(), _resident(),                                     # after-skip
            ],
            out_specs=pl.BlockSpec((e_tile, Hp), lambda e: (e, 0)),
        ),
        compiler_params=pltpu.CompilerParams(
            dimension_semantics=("parallel",),
            vmem_limit_bytes=vmem_limit,
        ),
    )(xp, scat, w_ji, b_ji, w_before, b_before, w_lin, b_lin, w_after, b_after)

    return out[:E, :H]


# --------------------------------------------------------------------------
# Pure-JAX reference (mirrors the PyTorch forward) and synthetic params
# --------------------------------------------------------------------------
def reference(x, rbf, sbf, idx_kj, idx_ji, p):
    rbf_p = rbf @ p["w_rbf"]
    sbf_p = sbf @ p["w_sbf"]
    x_ji = jax.nn.silu(x @ p["w_ji"] + p["b_ji"])
    x_kj = jax.nn.silu(x @ p["w_kj"] + p["b_kj"]) * rbf_p
    g = x_kj[idx_kj]
    t = jnp.einsum("wj,wl,ijl->wi", sbf_p, g, p["W_bil"])
    scat = jax.ops.segment_sum(t, idx_ji, num_segments=x.shape[0])
    h = x_ji + scat
    for i in range(0, p["w_before"].shape[0], 2):
        h = h + jax.nn.silu(jax.nn.silu(h @ p["w_before"][i] + p["b_before"][i])
                            @ p["w_before"][i + 1] + p["b_before"][i + 1])
    h = jax.nn.silu(h @ p["w_lin"] + p["b_lin"]) + x
    for i in range(0, p["w_after"].shape[0], 2):
        h = h + jax.nn.silu(jax.nn.silu(h @ p["w_after"][i] + p["b_after"][i])
                            @ p["w_after"][i + 1] + p["b_after"][i + 1])
    return h


def make_params(key, H, num_bilinear, num_spherical, num_radial,
                num_before_skip, num_after_skip):
    # Deterministic synthetic init; shapes match the PyTorch module
    # (biases = 0 as in reset_parameters). Weights stored [in, out].
    ks = jax.random.split(key, 8)
    s = 0.1
    p = {}
    p["w_rbf"] = s * jax.random.normal(ks[0], (num_radial, H), jnp.float32)
    p["w_sbf"] = s * jax.random.normal(ks[1], (num_spherical * num_radial, num_bilinear), jnp.float32)
    p["w_kj"] = s * jax.random.normal(ks[2], (H, H), jnp.float32)
    p["b_kj"] = jnp.zeros((1, H), jnp.float32)
    p["w_ji"] = s * jax.random.normal(ks[3], (H, H), jnp.float32)
    p["b_ji"] = jnp.zeros((1, H), jnp.float32)
    p["W_bil"] = (2.0 / H) * jax.random.normal(ks[4], (H, num_bilinear, H), jnp.float32)
    p["w_before"] = s * jax.random.normal(ks[5], (2 * num_before_skip, H, H), jnp.float32)
    p["b_before"] = jnp.zeros((2 * num_before_skip, 1, H), jnp.float32)
    p["w_lin"] = s * jax.random.normal(ks[6], (H, H), jnp.float32)
    p["b_lin"] = jnp.zeros((1, H), jnp.float32)
    p["w_after"] = s * jax.random.normal(ks[7], (2 * num_after_skip, H, H), jnp.float32)
    p["b_after"] = jnp.zeros((2 * num_after_skip, 1, H), jnp.float32)
    return p


if __name__ == "__main__":
    # Small shapes consistent with the module's forward (exercise padding and
    # multiple grid steps on the triplet axis / core split).
    E = 20                # edges / messages (rows of x)
    T = 200               # triplets (rows of sbf / idx arrays)
    H = 32                # hidden_channels (padded to 128 lanes internally)
    num_bilinear = 8
    num_spherical = 7
    num_radial = 6
    num_before_skip = 1
    num_after_skip = 2

    key = jax.random.PRNGKey(0)
    k_x, k_rbf, k_sbf, k_kj, k_ji, k_p = jax.random.split(key, 6)

    x = jax.random.normal(k_x, (E, H), jnp.float32)
    rbf = jax.random.normal(k_rbf, (E, num_radial), jnp.float32)
    sbf = jax.random.normal(k_sbf, (T, num_spherical * num_radial), jnp.float32)
    idx_kj = jax.random.randint(k_kj, (T,), 0, E, jnp.int32)
    idx_ji = jax.random.randint(k_ji, (T,), 0, E, jnp.int32)

    params = make_params(k_p, H, num_bilinear, num_spherical, num_radial,
                         num_before_skip, num_after_skip)

    out = interaction_block(x, rbf, sbf, idx_kj, idx_ji, params)
    out = jax.block_until_ready(out)

    ref = jax.block_until_ready(reference(x, rbf, sbf, idx_kj, idx_ji, params))
    # bf16 x bf16 matmuls (f32 accumulation) throughout -> ~1e-2 relative error.
    np.testing.assert_allclose(np.asarray(out), np.asarray(ref), rtol=5e-2, atol=5e-2)

    print("KERNEL_OK")
</pallas_src>

<mosaic_0001>
module attributes {stable_mosaic.version = 11 : i64} {
  func.func @xkj_kernel(%arg0: i32, %arg1: memref<128x128xf32, #tpu.memory_space<vmem>>, %arg2: memref<128x6xf32, #tpu.memory_space<vmem>>, %arg3: memref<128x128xbf16, #tpu.memory_space<vmem>>, %arg4: memref<1x128xf32, #tpu.memory_space<vmem>>, %arg5: memref<6x128xbf16, #tpu.memory_space<vmem>>, %arg6: memref<128x128xbf16, #tpu.memory_space<vmem>>) attributes {dimension_semantics = [#tpu.dimension_semantics<parallel>], iteration_bounds = array<i64: 1>, scalar_prefetch = 0 : i64, scratch_operands = 0 : i64, tpu.core_type = #tpu.core_type<tc>, window_params = [{transform_indices = @transform_0, window_bounds = array<i64: 128, 128>}, {transform_indices = @transform_1, window_bounds = array<i64: 128, 6>}, {pipeline_mode = #tpu.pipeline_mode<synchronous>, transform_indices = @transform_2, window_bounds = array<i64: 128, 128>}, {pipeline_mode = #tpu.pipeline_mode<synchronous>, transform_indices = @transform_3, window_bounds = array<i64: 1, 128>}, {pipeline_mode = #tpu.pipeline_mode<synchronous>, transform_indices = @transform_4, window_bounds = array<i64: 6, 128>}, {transform_indices = @transform_5, window_bounds = array<i64: 128, 128>}]} {
    %c0 = arith.constant 0 : index
    %c0_0 = arith.constant 0 : index
    %0 = vector.load %arg2[%c0, %c0_0] : memref<128x6xf32, #tpu.memory_space<vmem>>, vector<128x6xf32>
    %1 = arith.truncf %0 : vector<128x6xf32> to vector<128x6xbf16>
    %c0_1 = arith.constant 0 : index
    %c0_2 = arith.constant 0 : index
    %2 = vector.load %arg5[%c0_1, %c0_2] : memref<6x128xbf16, #tpu.memory_space<vmem>>, vector<6x128xbf16>
    %cst = arith.constant dense<0.000000e+00> : vector<128x128xf32>
    %3 = tpu.matmul %1, %2, %cst {dimension_numbers = #tpu.dot_dimension_numbers<[1], [0], [0], [1], [0, 0, 1, 1], [], []>} : vector<128x6xbf16>, vector<6x128xbf16>, vector<128x128xf32> -> vector<128x128xf32>
    %c0_3 = arith.constant 0 : index
    %c0_4 = arith.constant 0 : index
    %4 = vector.load %arg1[%c0_3, %c0_4] : memref<128x128xf32, #tpu.memory_space<vmem>>, vector<128x128xf32>
    %5 = arith.truncf %4 : vector<128x128xf32> to vector<128x128xbf16>
    %c0_5 = arith.constant 0 : index
    %c0_6 = arith.constant 0 : index
    %6 = vector.load %arg3[%c0_5, %c0_6] : memref<128x128xbf16, #tpu.memory_space<vmem>>, vector<128x128xbf16>
    %cst_7 = arith.constant dense<0.000000e+00> : vector<128x128xf32>
    %7 = tpu.matmul %5, %6, %cst_7 {dimension_numbers = #tpu.dot_dimension_numbers<[1], [0], [0], [1], [0, 0, 1, 1], [], []>} : vector<128x128xbf16>, vector<128x128xbf16>, vector<128x128xf32> -> vector<128x128xf32>
    %c0_8 = arith.constant 0 : index
    %c0_9 = arith.constant 0 : index
    %8 = vector.load %arg4[%c0_8, %c0_9] : memref<1x128xf32, #tpu.memory_space<vmem>>, vector<1x128xf32>
    %9 = vector.broadcast %8 : vector<1x128xf32> to vector<128x128xf32>
    %10 = arith.addf %7, %9 : vector<128x128xf32>
    %11 = arith.negf %10 : vector<128x128xf32>
    %12 = math.exp %11 : vector<128x128xf32>
    %cst_10 = arith.constant 1.000000e+00 : f32
    %13 = vector.broadcast %cst_10 : f32 to vector<128x128xf32>
    %14 = arith.addf %13, %12 : vector<128x128xf32>
    %15 = arith.divf %13, %14 : vector<128x128xf32>
    %16 = arith.mulf %10, %15 : vector<128x128xf32>
    %17 = arith.mulf %16, %3 : vector<128x128xf32>
    %18 = arith.truncf %17 : vector<128x128xf32> to vector<128x128xbf16>
    %c0_11 = arith.constant 0 : index
    %c0_12 = arith.constant 0 : index
    %19 = vector.load %arg6[%c0_11, %c0_12] : memref<128x128xbf16, #tpu.memory_space<vmem>>, vector<128x128xbf16>
    tpu.vector_store %arg6[%c0_11, %c0_12], %18 {strides = array<i32>} : memref<128x128xbf16, #tpu.memory_space<vmem>>, vector<128x128xbf16>,
    return
  }
  func.func @transform_0(%arg0: i32) -> (i32, i32) {
    %c0_i32 = arith.constant 0 : i32
    %c0_i32_0 = arith.constant 0 : i32
    return %arg0, %c0_i32 : i32, i32
  }
  func.func @transform_1(%arg0: i32) -> (i32, i32) {
    %c0_i32 = arith.constant 0 : i32
    %c0_i32_0 = arith.constant 0 : i32
    return %arg0, %c0_i32 : i32, i32
  }
  func.func @transform_2(%arg0: i32) -> (i32, i32) {
    %c0_i32 = arith.constant 0 : i32
    %c0_i32_0 = arith.constant 0 : i32
    %c0_i32_1 = arith.constant 0 : i32
    return %c0_i32, %c0_i32_0 : i32, i32
  }
  func.func @transform_3(%arg0: i32) -> (i32, i32) {
    %c0_i32 = arith.constant 0 : i32
    %c0_i32_0 = arith.constant 0 : i32
    %c0_i32_1 = arith.constant 0 : i32
    return %c0_i32, %c0_i32_0 : i32, i32
  }
  func.func @transform_4(%arg0: i32) -> (i32, i32) {
    %c0_i32 = arith.constant 0 : i32
    %c0_i32_0 = arith.constant 0 : i32
    %c0_i32_1 = arith.constant 0 : i32
    return %c0_i32, %c0_i32_0 : i32, i32
  }
  func.func @transform_5(%arg0: i32) -> (i32, i32) {
    %c0_i32 = arith.constant 0 : i32
    %c0_i32_0 = arith.constant 0 : i32
    return %arg0, %c0_i32 : i32, i32
  }
}

</mosaic_0001>

<bundles_post_ra>
// kernel: tpu_custom_call.1
= control target key start
LH: loop header
LB: loop body
LE: loop exit
PB: predicated region body
PF: predicated region fallthrough
CT: control target
= control target key end

     0   :  { %10 = vsyncpa [#allocation3], 0  ;;  %s1214_s0 = inlined_call_operand.vmem [shape: f32[128,128], index: 0, kind: input, shape index: {}]   ;;  %s1215_s1 = inlined_call_operand.vmem [shape: f32[128,6], index: 1, kind: input, shape index: {}]   ;;  %s1216_s2 = inlined_call_operand.hbm [shape: bf16[128,128], index: 2, kind: input, shape index: {}]   ;;  %s1217_s3 = inlined_call_operand.vmem [shape: f32[1,128], index: 3, kind: input, shape index: {}]   ;;  %s1218_s4 = inlined_call_operand.vmem [shape: bf16[6,128], index: 4, kind: input, shape index: {}]   ;;  %s1219_s5 = inlined_call_operand.hbm [shape: bf16[128,128], index: 5, kind: output, shape index: {}]  }
   0x1   :  { %11 = vsyncpa [#allocation4], 0  ;;  %s928_s18 = smov [#allocation2]  }
   0x2   :  { %s21_s19 = sshll.u32 %s928_s18, 4  ;;  %s22_s19 = int_to_ptr.vmem [resolvable:$true] %s21_s19 }
   0x3   :  { %s892_s20 = scalar_lea.vmem %s22_s19, 1024  ;;  %p897_p1 = scmp.lt.s32.totalorder %s22_s19, %s22_s19 }
   0x4   :  { %p893_p0 = scmp.ne.s32.totalorder %s22_s19, %s892_s20  ;;  %p898_p2 = scmp.lt.s32.totalorder %s892_s20, %s892_s20 }
   0x6   :  { %p899_p3 = por %p898_p2, %p897_p1 }
   0x8   :  { %p900_p4 = pnand %p899_p3, %p893_p0 }
   0xa   :  { %903 = shalt.err (!%p900_p4)
}
   0xb   :  { %s929_s21 = smov 64   ;;  %s930_s22 = smov 4  }
   0xc   :  { %27 = dma.hbm_to_vmem [thread:$0]  %s1216_s2, 1024, %s22_s19, [#allocation3], %s929_s21, %s929_s21, %s930_s22  }
   0xd   :  { %924 = dma.done.wait [#allocation3], 1024  }
   0xe   :  { %925 = vsyncadd [#allocation3], 4294966272  ;;  %vm86_vm0 = vcmask 1042432   ;;  %v60_v0 = vld [vmem:[%s1218_s4] sm:$0x7]  ;;  %v812_v2 = vld [vmem:[#allocation2 + $0x38] sm:$0xff]  }
   0xf   :  { %807 = vmatprep.subr.msk.bf16.mxu0 %vm86_vm0, %v60_v0  ;;  %v88_v1 = vsel %vm86_vm0, %v60_v0, 0  ;;  %v36_v3 = vld [vmem:[%s1215_s1] sm:$0xff]  ;;  %v37_v4 = vld [vmem:[%s1215_s1 + $0x8] sm:$0xff]  ;;  %vm61_vm1 = vcmask 48128   ;;  %v38_v6 = vld [vmem:[%s1215_s1 + $0x10] sm:$0xff]  ;;  %791 = vmatprep.subr.bf16.mxu1 %v812_v2 }
  0x10   :  { %742 = vmatpush3.bf16.msra.mxu0 %v88_v1  ;;  %v52_v5 = vpack.c.bf16 %v37_v4, %v36_v3  ;;  %v39_v7 = vld [vmem:[%s1215_s1 + $0x18] sm:$0xff]  ;;  %v813_v9 = vld [vmem:[#allocation2 + $0x30] sm:$0xff]   ;;  %799 = vmatpush3.bf16.msra.mxu1 %v812_v2  ;;  %v40_v10 = vld [vmem:[%s1215_s1 + $0x20] sm:$0xff] }
  0x11   :  { %v53_v8 = vpack.c.bf16 %v39_v7, %v38_v6  ;;  %759 = vmatprep.subr.bf16.mxu0 %v812_v2  ;;  %792 = vmatprep.subr.bf16.mxu1 %v813_v9  ;;  %v814_v11 = vld [vmem:[#allocation2 + $0x28] sm:$0xff]   ;;  %v42_v13 = vld [vmem:[%s1215_s1 + $0x30] sm:$0xff]  ;;  %v43_v15 = vld [vmem:[%s1215_s1 + $0x38] sm:$0xff] }
  0x12   :  { %743 = vmatprep.mubr.msk.bf16.mxu0 %vm61_vm1, %v52_v5  ;;  %v41_v12 = vld [vmem:[%s1215_s1 + $0x28] sm:$0xff]  ;;  %v44_v16 = vld [vmem:[%s1215_s1 + $0x40] sm:$0xff]  ;;  %v55_v18 = vpack.c.bf16 %v43_v15, %v42_v13  ;;  %v816_v21 = vld [vmem:[#allocation2 + $0x18] sm:$0xff]  }
  0x13   :  { %744 = vmatmul.mubr.msk.bf16.vlgmr.msra.gmra.mxu0 %vm61_vm1, %v53_v8  ;;  %v54_v14 = vpack.c.bf16 %v41_v12, %v40_v10  ;;  %v45_v17 = vld [vmem:[%s1215_s1 + $0x48] sm:$0xff]  ;;  %v815_v19 = vld [vmem:[#allocation2 + $0x20] sm:$0xff]   ;;  %v46_v23 = vld [vmem:[%s1215_s1 + $0x50] sm:$0xff] }
  0x14   :  { %760 = vmatpush3.bf16.msra.mxu0 %v812_v2  ;;  %800 = vmatpush3.bf16.msra.mxu1 %v813_v9  ;;  %v56_v20 = vpack.c.bf16 %v45_v17, %v44_v16  ;;  %v191_v22 = vld [vmem:[%s1214_s0 + $0x20] sm:$0xff]  ;;  %v47_v24 = vld [vmem:[%s1215_s1 + $0x58] sm:$0xff]  ;;  %v192_v25 = vld [vmem:[%s1214_s0 + $0x28] sm:$0xff] }
  0x15   :  { %761 = vmatprep.subr.bf16.mxu0 %v813_v9  ;;  %747 = vmatprep.mubr.msk.bf16.mxu0 %vm61_vm1, %v54_v14  ;;  %v48_v26 = vld [vmem:[%s1215_s1 + $0x60] sm:$0xff]  ;;  %v49_v27 = vld [vmem:[%s1215_s1 + $0x68] sm:$0xff]  ;;  %v205_v28 = vpack.c.bf16 %v192_v25, %v191_v22  ;;  %v57_v29 = vpack.c.bf16 %v47_v24, %v46_v23  ;;  %v817_v30 = vld [vmem:[#allocation2 + $0x10] sm:$0xff]  }
  0x16   :  { %793 = vmatprep.subr.bf16.mxu1 %v814_v11  ;;  %v58_v31 = vpack.c.bf16 %v49_v27, %v48_v26  ;;  %v818_v32 = vld [vmem:[#allocation2 + $0x8] sm:$0xff]   ;;  %v50_v33 = vld [vmem:[%s1215_s1 + $0x70] sm:$0xff]  ;;  %v51_v34 = vld [vmem:[%s1215_s1 + $0x78] sm:$0xff] }
  0x17   :  { %779 = vmatprep.mubr.bf16.mxu1 %v205_v28  ;;  %v187_v35 = vld [vmem:[%s1214_s0] sm:$0xff]  ;;  %v188_v36 = vld [vmem:[%s1214_s0 + $0x8] sm:$0xff]  ;;  %v59_v37 = vpack.c.bf16 %v51_v34, %v50_v33  ;;  %v193_v40 = vld [vmem:[%s1214_s0 + $0x30] sm:$0xff] }
  0x18   :  { %762 = vmatpush3.bf16.msra.mxu0 %v813_v9  ;;  %801 = vmatpush3.bf16.msra.mxu1 %v814_v11  ;;  %v819_v38 = vld [vmem:[#allocation2] sm:$0xff]   ;;  %v203_v39 = vpack.c.bf16 %v188_v36, %v187_v35  ;;  %v194_v41 = vld [vmem:[%s1214_s0 + $0x38] sm:$0xff]  ;;  %v196_v43 = vld [vmem:[%s1214_s0 + $0x48] sm:$0xff] }
  0x19   :  { %763 = vmatprep.subr.bf16.mxu0 %v814_v11  ;;  %794 = vmatprep.subr.bf16.mxu1 %v815_v19  ;;  %v195_v42 = vld [vmem:[%s1214_s0 + $0x40] sm:$0xff]  ;;  %v189_v44 = vld [vmem:[%s1214_s0 + $0x10] sm:$0xff]  ;;  %v190_v45 = vld [vmem:[%s1214_s0 + $0x18] sm:$0xff]  ;;  %v206_v46 = vpack.c.bf16 %v194_v41, %v193_v40 }
  0x1a   :  { %v207_v47 = vpack.c.bf16 %v196_v43, %v195_v42  ;;  %v204_v48 = vpack.c.bf16 %v190_v45, %v189_v44  ;;  %v197_v49 = vld [vmem:[%s1214_s0 + $0x50] sm:$0xff]  ;;  %v198_v50 = vld [vmem:[%s1214_s0 + $0x58] sm:$0xff]  ;;  %v199_v51 = vld [vmem:[%s1214_s0 + $0x60] sm:$0xff] }
  0x1b   :  { %748 = vmatmul.mubr.msk.bf16.gmra.mxu0 %vm61_vm1, %v55_v18  ;;  %v200_v52 = vld [vmem:[%s1214_s0 + $0x68] sm:$0xff]  ;;  %v208_v53 = vpack.c.bf16 %v198_v50, %v197_v49  ;;  %v201_v55 = vld [vmem:[%s1214_s0 + $0x70] sm:$0xff]  ;;  %v202_v56 = vld [vmem:[%s1214_s0 + $0x78] sm:$0xff] }
  0x1c   :  { %764 = vmatpush3.bf16.msra.mxu0 %v814_v11  ;;  %751 = vmatprep.mubr.msk.bf16.mxu0 %vm61_vm1, %v56_v20  ;;  %v209_v54 = vpack.c.bf16 %v200_v52, %v199_v51  ;;  %v210_v57 = vpack.c.bf16 %v202_v56, %v201_v55  ;;  %v1108_v9 = vld [vmem:[%s1217_s3] ss:$0 sm:$0xff]  ;;  %s931_s3 = smov [#allocation5]  }
  0x1d   :  { %765 = vmatprep.subr.bf16.mxu0 %v815_v19  ;;  %802 = vmatpush3.bf16.msra.mxu1 %v815_v19  ;;  %s592_s14 = sshll.u32 %s931_s3, 4  ;;  %s593_s14 = int_to_ptr.vmem [resolvable:$true] %s592_s14 }
  0x1e   :  { %795 = vmatprep.subr.bf16.mxu1 %v816_v21  ;;  %s904_s15 = scalar_lea.vmem %s593_s14, 1024  ;;  %p909_p6 = scmp.lt.s32.totalorder %s593_s14, %s593_s14 }
  0x1f   :  { %p905_p5 = scmp.ne.s32.totalorder %s593_s14, %s904_s15  ;;  %p910_p7 = scmp.lt.s32.totalorder %s904_s15, %s904_s15 }
  0x20   :  { %766 = vmatpush3.bf16.msra.mxu0 %v815_v19 }
  0x21   :  { %767 = vmatprep.subr.bf16.mxu0 %v816_v21  ;;  %803 = vmatpush3.bf16.msra.mxu1 %v816_v21  ;;  %p911_p8 = por %p910_p7, %p909_p6 }
  0x22   :  { %796 = vmatprep.subr.bf16.mxu1 %v817_v30 }
  0x23   :  { %752 = vmatmul.mubr.msk.bf16.gmra.mxu0 %vm61_vm1, %v57_v29  ;;  %p912_p9 = pnand %p911_p8, %p905_p5 }
  0x24   :  { %768 = vmatpush3.bf16.msra.mxu0 %v816_v21  ;;  %755 = vmatprep.mubr.msk.bf16.mxu0 %vm61_vm1, %v58_v31 }
  0x25   :  { %769 = vmatprep.subr.bf16.mxu0 %v817_v30  ;;  %804 = vmatpush3.bf16.msra.mxu1 %v817_v30 }
  0x26   :  { %797 = vmatprep.subr.bf16.mxu1 %v818_v32 }
  0x28   :  { %770 = vmatpush3.bf16.msra.mxu0 %v817_v30 }
  0x29   :  { %771 = vmatprep.subr.bf16.mxu0 %v818_v32  ;;  %805 = vmatpush3.bf16.msra.mxu1 %v818_v32 }
  0x2a   :  { %798 = vmatprep.subr.bf16.mxu1 %v819_v38 }
  0x2b   :  { %756 = vmatmul.mubr.msk.bf16.gmra.mxu0 %vm61_vm1, %v59_v37 }
  0x2c   :  { %772 = vmatpush3.bf16.msra.mxu0 %v818_v32  ;;  %775 = vmatprep.mubr.bf16.mxu0 %v203_v39 }
  0x2d   :  { %773 = vmatprep.subr.bf16.mxu0 %v819_v38  ;;  %806 = vmatpush3.bf16.msra.mxu1 %v819_v38 }
  0x30   :  { %774 = vmatpush3.bf16.msra.mxu0 %v819_v38  ;;  %780 = vmatmul.mubr.bf16.vlgmr.msra.gmra.mxu1 %v206_v46 }
  0x31   :  { %783 = vmatprep.mubr.bf16.mxu1 %v207_v47 }
  0x33   :  { %776 = vmatmul.mubr.bf16.vlgmr.msra.gmra.mxu0 %v204_v48 }
  0x38   :  { %784 = vmatmul.mubr.bf16.gmra.mxu1 %v208_v53 }
  0x39   :  { %787 = vmatprep.mubr.bf16.mxu1 %v209_v54 }
  0x40   :  { %788 = vmatmul.mubr.bf16.gmra.mxu1 %v210_v57 }
  0xd3   :  { %v1075_v58 = vpop.f32.mrf.mxu0 }
  0xd5   :  { %v1077_v59 = vpop.f32.mrf.mxu0 }
  0xd7   :  { %v1079_v60 = vpop.f32.mrf.mxu0 }
  0xd9   :  { %v1081_v61 = vpop.f32.mrf.mxu0 }
  0xdb   :  { %v1083_v62 = vpop.f32.mrf.mxu0 }
  0xdd   :  { %v1085_v63 = vpop.f32.mrf.mxu0 }
  0xdf   :  { %v1087_v0 = vpop.f32.mrf.mxu0 }
  0xe1   :  { %v1089_v1 = vpop.f32.mrf.mxu0 }
  0xe3   :  { %v1091_v2 = vpop.f32.mrf.mxu0 }
  0xe5   :  { %v1093_v3 = vpop.f32.mrf.mxu0 }
  0xe7   :  { %v1095_v4 = vpop.f32.mrf.mxu0 }
  0xe9   :  { %v1097_v5 = vpop.f32.mrf.mxu0 }
  0xeb   :  { %v1099_v6 = vpop.f32.mrf.mxu0 }
  0xed   :  { %v1101_v7 = vpop.f32.mrf.mxu0 }
  0xef   :  { %v1103_v8 = vpop.f32.mrf.mxu0 }
  0xf0   :  { %v781_v11 = vpop.f32.mrf.mxu1 }
  0xf1   :  { %v1110_v10 = vpop.f32.mrf.mxu0  ;;  %v1113_v12 = vadd.f32 %v781_v11, %v1108_v9 }
  0xf2   :  { %v332_v14 = vpop.f32.mrf.mxu1 }
  0xf3   :  { %v777_v13 = vpop.f32.mrf.mxu0  ;;  %v627_v15 = vmul.f32 -1.442695, %v1113_v12  ;;  %v1120_v17 = vadd.f32 %v1108_v9, %v332_v14 }
  0xf4   :  { %v1117_v16 = vadd.f32 %v777_v13, %v1108_v9  ;;  %v782_v19 = vpop.f32.mrf.mxu1 }
  0xf5   :  { %v316_v18 = vpop.f32.mrf.mxu0  ;;  %820 = vpow2.f32 %v627_v15  ;;  %v625_v21 = vmul.f32 -1.442695, %v1120_v17  ;;  %v1128_v23 = vadd.f32 %v782_v19, %v1108_v9 }
  0xf6   :  { %v623_v20 = vmul.f32 -1.442695, %v1117_v16  ;;  %v1125_v22 = vadd.f32 %v1108_v9, %v316_v18  ;;  %v335_v25 = vpop.f32.mrf.mxu1 }
  0xf7   :  { %v778_v24 = vpop.f32.mrf.mxu0  ;;  %v1135_v28 = vadd.f32 %v1108_v9, %v335_v25  ;;  %v628_v29 = vmul.f32 -1.442695, %v1128_v23 }
  0xf8   :  { %822 = vpow2.f32 %v623_v20  ;;  %v621_v26 = vmul.f32 -1.442695, %v1125_v22  ;;  %v1132_v27 = vadd.f32 %v778_v24, %v1108_v9  ;;  %v785_v31 = vpop.f32.mrf.mxu1 }
  0xf9   :  { %824 = vpow2.f32 %v625_v21  ;;  %v319_v30 = vpop.f32.mrf.mxu0  ;;  %v626_v33 = vmul.f32 -1.442695, %v1135_v28  ;;  %v1144_v35 = vadd.f32 %v785_v31, %v1108_v9 }
  0xfa   :  { %826 = vpow2.f32 %v621_v26  ;;  %v624_v32 = vmul.f32 -1.442695, %v1132_v27  ;;  %v1141_v34 = vadd.f32 %v1108_v9, %v319_v30  ;;  %v348_v36 = vpop.f32.mrf.mxu1 }
  0xfb   :  { %828 = vpow2.f32 %v628_v29  ;;  %v1148_v38 = vadd.f32 %v1108_v9, %v348_v36  ;;  %v631_v39 = vmul.f32 -1.442695, %v1144_v35 }
  0xfc   :  { %830 = vpow2.f32 %v624_v32  ;;  %v622_v37 = vmul.f32 -1.442695, %v1141_v34  ;;  %v786_v40 = vpop.f32.mrf.mxu1 }
  0xfd   :  { %832 = vpow2.f32 %v626_v33  ;;  %v629_v41 = vmul.f32 -1.442695, %v1148_v38  ;;  %v1153_v42 = vadd.f32 %v786_v40, %v1108_v9 }
  0xfe   :  { %834 = vpow2.f32 %v622_v37  ;;  %v351_v43 = vpop.f32.mrf.mxu1 }
  0xff   :  { %836 = vpow2.f32 %v631_v39  ;;  %v632_v44 = vmul.f32 -1.442695, %v1153_v42  ;;  %v1157_v45 = vadd.f32 %v1108_v9, %v351_v43 }
 0x100   :  { %838 = vpow2.f32 %v629_v41  ;;  %v789_v46 = vpop.f32.mrf.mxu1 }
 0x101   :  { %840 = vpow2.f32 %v632_v44  ;;  %v630_v47 = vmul.f32 -1.442695, %v1157_v45  ;;  %v1161_v48 = vadd.f32 %v789_v46, %v1108_v9 }
 0x102   :  { %v821_v49 = vpop.eup %820  ;;  %v364_v50 = vpop.f32.mrf.mxu1 }
 0x103   :  { %v433_v51 = vadd.f32 1.0, %v821_v49  ;;  %842 = vpow2.f32 %v630_v47  ;;  %v635_v52 = vmul.f32 -1.442695, %v1161_v48  ;;  %v1165_v19 = vadd.f32 %v1108_v9, %v364_v50 }
 0x104   :  { %v790_v56 = vpop.f32.mrf.mxu1 }
 0x105   :  { %v823_v53 = vpop.eup %822  ;;  %844 = vrcp.f32 %v433_v51  ;;  %v1168_v29 = vadd.f32 %v790_v56, %v1108_v9  ;;  %v633_v36 = vmul.f32 -1.442695, %v1165_v19 }
 0x106   :  { %v825_v54 = vpop.eup %824  ;;  %v429_v55 = vadd.f32 1.0, %v823_v53  ;;  %846 = vpow2.f32 %v635_v52  ;;  %v367_v24 = vpop.f32.mrf.mxu1 }
 0x107   :  { %v827_v57 = vpop.eup %826  ;;  %v431_v11 = vadd.f32 1.0, %v825_v54  ;;  %v1172_v37 = vadd.f32 %v1108_v9, %v367_v24  ;;  %v636_v41 = vmul.f32 -1.442695, %v1168_v29 }
 0x108   :  { %v829_v13 = vpop.eup %828  ;;  %848 = vrcp.f32 %v429_v55  ;;  %v427_v14 = vadd.f32 1.0, %v827_v57 }
 0x109   :  { %v831_v15 = vpop.eup %830  ;;  %850 = vrcp.f32 %v431_v11  ;;  %v434_v18 = vadd.f32 1.0, %v829_v13  ;;  %v634_v46 = vmul.f32 -1.442695, %v1172_v37 }
 0x10a   :  { %v833_v20 = vpop.eup %832  ;;  %852 = vrcp.f32 %v427_v14  ;;  %v430_v21 = vadd.f32 1.0, %v831_v15 }
 0x10b   :  { %v835_v25 = vpop.eup %834  ;;  %854 = vrcp.f32 %v434_v18  ;;  %v432_v26 = vadd.f32 1.0, %v833_v20 }
 0x10c   :  { %v837_v30 = vpop.eup %836  ;;  %856 = vrcp.f32 %v430_v21  ;;  %v428_v31 = vadd.f32 1.0, %v835_v25 }
 0x10d   :  { %v839_v32 = vpop.eup %838  ;;  %858 = vrcp.f32 %v432_v26  ;;  %v437_v33 = vadd.f32 1.0, %v837_v30 }
 0x10e   :  { %860 = vrcp.f32 %v428_v31  ;;  %v435_v39 = vadd.f32 1.0, %v839_v32  ;;  %v841_v40 = vpop.eup %840 }
 0x10f   :  { %862 = vrcp.f32 %v437_v33  ;;  %v438_v43 = vadd.f32 1.0, %v841_v40 }
 0x110   :  { %864 = vrcp.f32 %v435_v39  ;;  %v843_v44 = vpop.eup %842 }
 0x111   :  { %866 = vpow2.f32 %v633_v36  ;;  %v436_v47 = vadd.f32 1.0, %v843_v44 }
 0x112   :  { %868 = vrcp.f32 %v438_v43  ;;  %v845_v49 = vpop.eup %844 }
 0x113   :  { %870 = vpow2.f32 %v636_v41  ;;  %v847_v50 = vpop.eup %846  ;;  %v481_v53 = vmul.f32 %v845_v49, %v1113_v12 }
 0x114   :  { %872 = vrcp.f32 %v436_v47  ;;  %v441_v24 = vadd.f32 1.0, %v847_v50 }
 0x115   :  { %v849_v9 = vpop.eup %848  ;;  %874 = vpow2.f32 %v634_v46  ;;  %v497_v20 = vmul.f32 %v1083_v62, %v481_v53 }
 0x116   :  { %v851_v51 = vpop.eup %850  ;;  %v477_v55 = vmul.f32 %v849_v9, %v1117_v16  ;;  %876 = vrcp.f32 %v441_v24 }
 0x117   :  { %v853_v52 = vpop.eup %852  ;;  %v479_v57 = vmul.f32 %v851_v51, %v1120_v17 }
 0x118   :  { %v855_v54 = vpop.eup %854  ;;  %v475_v14 = vmul.f32 %v853_v52, %v1125_v22  ;;  %v493_v16 = vmul.f32 %v1075_v58, %v477_v55 }
 0x119   :  { %v857_v56 = vpop.eup %856  ;;  %v482_v11 = vmul.f32 %v855_v54, %v1128_v23  ;;  %v495_v22 = vmul.f32 %v479_v57, %v1085_v63 }
 0x11a   :  { %v859_v13 = vpop.eup %858  ;;  %v478_v15 = vmul.f32 %v857_v56, %v1132_v27  ;;  %v491_v62 = vmul.f32 %v475_v14, %v1077_v59 }
 0x11b   :  { %v861_v18 = vpop.eup %860  ;;  %v498_v21 = vmul.f32 %v1087_v0, %v482_v11  ;;  %v480_v12 = vmul.f32 %v859_v13, %v1135_v28 }
 0x11c   :  { %v863_v25 = vpop.eup %862  ;;  %v494_v17 = vmul.f32 %v1079_v60, %v478_v15  ;;  %v476_v23 = vmul.f32 %v861_v18, %v1141_v34 }
 0x11d   :  { %v865_v26 = vpop.eup %864  ;;  %v687_v30 = vpack.c.bf16 %v498_v21, %v497_v20  ;;  %v496_v27 = vmul.f32 %v480_v12, %v1089_v1  ;;  %v485_v32 = vmul.f32 %v863_v25, %v1144_v35 }
 0x11e   :  { %v867_v31 = vpop.eup %866  ;;  %v677_v0 = vpack.c.bf16 %v494_v17, %v493_v16  ;;  %v492_v28 = vmul.f32 %v476_v23, %v1081_v61  ;;  %v483_v63 = vmul.f32 %v865_v26, %v1148_v38 }
 0x11f   :  { %v869_v33 = vpop.eup %868  ;;  %711 = vst [vmem:[#allocation5 + $0x18] sm:$0xff] %v687_v30   ;;  %v682_v58 = vpack.c.bf16 %v496_v27, %v495_v22  ;;  %v439_v60 = vadd.f32 1.0, %v867_v31  ;;  %v501_v61 = vmul.f32 %v1091_v2, %v485_v32 }
 0x120   :  { %v871_v34 = vpop.eup %870  ;;  %709 = vst [vmem:[#allocation5 + $0x8] sm:$0xff] %v677_v0   ;;  %v672_v36 = vpack.c.bf16 %v492_v28, %v491_v62  ;;  %v486_v1 = vmul.f32 %v869_v33, %v1153_v42  ;;  %v499_v44 = vmul.f32 %v483_v63, %v1093_v3 }
 0x121   :  { %v873_v39 = vpop.eup %872  ;;  %710 = vst [vmem:[#allocation5 + $0x10] sm:$0xff] %v682_v58   ;;  %878 = vrcp.f32 %v439_v60  ;;  %v442_v59 = vadd.f32 1.0, %v871_v34 }
 0x122   :  { %v875_v40 = vpop.eup %874  ;;  %673 = vst [vmem:[#allocation5] sm:$0xff] %v672_v36   ;;  %v502_v35 = vmul.f32 %v1095_v4, %v486_v1  ;;  %v484_v41 = vmul.f32 %v873_v39, %v1157_v45 }
 0x123   :  { %880 = vrcp.f32 %v442_v59  ;;  %v440_v43 = vadd.f32 1.0, %v875_v40  ;;  %v877_v47 = vpop.eup %876 }
 0x124   :  { %v697_v46 = vpack.c.bf16 %v502_v35, %v501_v61  ;;  %v500_v38 = vmul.f32 %v484_v41, %v1097_v5  ;;  %v489_v50 = vmul.f32 %v877_v47, %v1161_v48 }
 0x125   :  { %882 = vrcp.f32 %v440_v43 }
 0x126   :  { %713 = vst [vmem:[#allocation5 + $0x28] sm:$0xff] %v697_v46   ;;  %v692_v42 = vpack.c.bf16 %v500_v38, %v499_v44  ;;  %v505_v51 = vmul.f32 %v1099_v6, %v489_v50 }
 0x128   :  { %712 = vst [vmem:[#allocation5 + $0x20] sm:$0xff] %v692_v42  }
 0x12e   :  { %v879_v49 = vpop.eup %878 }
 0x12f   :  { %v487_v4 = vmul.f32 %v879_v49, %v1165_v19 }
 0x130   :  { %v881_v2 = vpop.eup %880 }
 0x131   :  { %v490_v45 = vmul.f32 %v881_v2, %v1168_v29  ;;  %v503_v52 = vmul.f32 %v487_v4, %v1101_v7 }
 0x132   :  { %v883_v9 = vpop.eup %882 }
 0x133   :  { %v506_v3 = vmul.f32 %v1103_v8, %v490_v45  ;;  %v488_v5 = vmul.f32 %v883_v9, %v1172_v37 }
 0x135   :  { %v707_v53 = vpack.c.bf16 %v506_v3, %v505_v51  ;;  %v504_v54 = vmul.f32 %v488_v5, %v1110_v10 }
 0x137   :  { %715 = vst [vmem:[#allocation5 + $0x38] sm:$0xff] %v707_v53   ;;  %v702_v48 = vpack.c.bf16 %v504_v54, %v503_v52 }
 0x139   :  { %714 = vst [vmem:[#allocation5 + $0x30] sm:$0xff] %v702_v48  }
 0x13a   :  { %915 = shalt.err (!%p912_p9)
}
 0x13b   :  { %598 = dma.vmem_to_hbm [thread:$0]  %s593_s14, 1024, %s1219_s5, [#allocation4], %s929_s21, %s929_s21, %s930_s22  }
 0x13c   :  { %926 = dma.done.wait [#allocation4], 1024  }
 0x13d   :  { %927 = vsyncadd [#allocation4], 4294966272 }
 0x13e   :  { %602 = vsyncpa [#allocation3], 1 }
 0x13f   :  { %603 = vsyncpa [#allocation4], 1 }

</bundles_post_ra>
